<compile_context>
chip_gen: v5e
topology: v5e:2x2
jax: 0.10.0
libtpu: 0.0.40
codegen_flags: <defaults>
</compile_context>

<pallas_src>
import functools

import numpy as np
import jax
import jax.numpy as jnp
from jax import lax
from jax.experimental import pallas as pl
from jax.experimental.pallas import tpu as pltpu

WIN_SIZE = 11
WIN_SIGMA = 1.5
K1 = 0.01
K2 = 0.03
DATA_RANGE = 1.0
C1 = (K1 * DATA_RANGE) ** 2
C2 = (K2 * DATA_RANGE) ** 2

# MXU operand dtype for the two filter matmuls (accumulation is always f32).
_MXU_DTYPE = jnp.bfloat16


def _round_up(x, m):
    return ((x + m - 1) // m) * m


def _gaussian_window(win_size, sigma):
    coords = np.arange(win_size, dtype=np.float64) - (win_size - 1) / 2.0
    g = np.exp(-(coords ** 2) / (2.0 * sigma ** 2))
    g /= g.sum()
    return g.astype(np.float32)


_WIN = _gaussian_window(WIN_SIZE, WIN_SIGMA)   # deterministic "parameters"


def _choose_pack(n_planes, H):
    """Planes packed per grid step.

    Perf-review constraints:
      * pack * H <= 128           -> block-diag vertical matmul K fits one MXU
                                     tile (its zeros are free) and gvb is tiny.
      * n_steps >= min(4, n_planes) -> pipelining stays alive; both v7x cores fed.
      * only pack when H % 8 == 0 -> the (pack,H,W)->(pack*H,W) reshape is
                                     layout-trivial.
    """
    if H % 8 != 0:
        return 1
    min_steps = min(4, n_planes)
    best = 1
    for p in range(1, n_planes + 1):
        if n_planes % p == 0 and p * H <= 128 and (n_planes // p) >= min_steps:
            best = p
    return best


@functools.lru_cache(maxsize=None)
def _filter_matrices(H, W, pack):
    """Banded 'valid' Gaussian filter matrices for the MXU (cached per shape).

    gh  (W, Wo_pad)            : tmp = moments @ gh   (horizontal / lane pass)
    gvb (pack*Ho_pad, pack*Hp) : out = gvb @ tmp      (vertical / sublane pass,
                                                       block-diag over planes)
    Padded rows/columns are zero, so 'valid' edge handling is exact and the
    padded output region is inert (masked or cropped later).
    """
    Ho, Wo = H - WIN_SIZE + 1, W - WIN_SIZE + 1
    Hp = _round_up(H, 8)
    Ho_pad = _round_up(Ho, 8)
    Wo_pad = _round_up(Wo, 128)

    gh = np.zeros((W, Wo_pad), np.float32)
    for j in range(Wo):
        gh[j:j + WIN_SIZE, j] = _WIN
    gv = np.zeros((Ho_pad, Hp), np.float32)
    for i in range(Ho):
        gv[i, i:i + WIN_SIZE] = _WIN
    gvb = np.zeros((pack * Ho_pad, pack * Hp), np.float32)
    for p in range(pack):
        gvb[p * Ho_pad:(p + 1) * Ho_pad, p * Hp:(p + 1) * Hp] = gv
    return (jnp.asarray(gh, dtype=_MXU_DTYPE),
            jnp.asarray(gvb, dtype=_MXU_DTYPE))


def _const_spec(shape):
    """BlockSpec for a grid-invariant constant; single-buffered (perf review)."""
    index_map = lambda i: (0, 0)
    try:
        return pl.BlockSpec(shape, index_map, pipeline_mode=pl.Buffered(1))
    except (AttributeError, TypeError):      # older Pallas without pipeline_mode
        return pl.BlockSpec(shape, index_map)


def _vmem_limit_bytes(estimate):
    cap = 64 * 1024 * 1024
    try:
        cap = int(pltpu.get_tpu_info().vmem_capacity_bytes)
    except Exception:
        pass
    # ~15% headroom for compiler internal scratch: ~54 MiB on v7x (64 MiB),
    # ~108 MiB on v5e/v6e (128 MiB) instead of the old hard 64 MiB clamp.
    ceiling = int(cap * 0.85)
    return int(min(max(2 * estimate, 32 * 1024 * 1024), ceiling))


def _vmem_estimate(pack, H, W, Hp, Ho_pad, Wo_pad, spatial_out):
    b = np.dtype(_MXU_DTYPE).itemsize
    est = 2 * 2 * pack * H * W * 4                               # pred/gt, 2 buffers
    est += (W * Wo_pad + (pack * Ho_pad) * (pack * Hp)) * b      # consts, single buf
    est += 5 * pack * Hp * (W + Wo_pad) * (4 + b)                # s / t temporaries
    est += 12 * pack * Ho_pad * Wo_pad * 4                       # moments + epilogue
    est += (2 * pack * Ho_pad * Wo_pad * 4) if spatial_out else 8
    return est


def _ssim_plane_map(gh_ref, gvb_ref, pred_ref, gt_ref):
    """f32 SSIM map for one packed block, shape (pack*Ho_pad, Wo_pad)."""
    pack, h, w = pred_ref.shape
    ph = pack * h
    php = gvb_ref.shape[1]                       # pack * Hp (sublane-padded)

    x = pred_ref[...].astype(jnp.float32).reshape(ph, w)
    y = gt_ref[...].astype(jnp.float32).reshape(ph, w)
    if php > ph:                                 # only when pack == 1 and H % 8 != 0
        x = jnp.pad(x, ((0, php - ph), (0, 0)))
        y = jnp.pad(y, ((0, php - ph), (0, 0)))

    gh = gh_ref[...]                             # (W, Wo_pad)
    gvb = gvb_ref[...]                           # (pack*Ho_pad, pack*Hp)

    # Five moments stacked along sublanes -> ONE tall horizontal MXU matmul
    # (bf16 operands, f32 accumulation).
    s = jnp.concatenate([x, y, x * x, y * y, x * y], axis=0)     # (5*php, W) f32
    t = jnp.dot(s.astype(gh.dtype), gh,
                preferred_element_type=jnp.float32)              # (5*php, Wo_pad)
    t = t.astype(gvb.dtype)

    # Vertical pass: block-diag Gaussian; K = pack*Hp <= 128 -> one MXU tile.
    mu1 = jnp.dot(gvb, t[0 * php:1 * php], preferred_element_type=jnp.float32)
    mu2 = jnp.dot(gvb, t[1 * php:2 * php], preferred_element_type=jnp.float32)
    exx = jnp.dot(gvb, t[2 * php:3 * php], preferred_element_type=jnp.float32)
    eyy = jnp.dot(gvb, t[3 * php:4 * php], preferred_element_type=jnp.float32)
    exy = jnp.dot(gvb, t[4 * php:5 * php], preferred_element_type=jnp.float32)

    mu1_sq = mu1 * mu1
    mu2_sq = mu2 * mu2
    mu1_mu2 = mu1 * mu2
    # Clamp at 0: guards bf16 cancellation noise on near-constant regions
    # (true variances are non-negative).
    sigma1_sq = jnp.maximum(exx - mu1_sq, 0.0)
    sigma2_sq = jnp.maximum(eyy - mu2_sq, 0.0)
    sigma12 = exy - mu1_mu2

    num = (2.0 * mu1_mu2 + C1) * (2.0 * sigma12 + C2)
    den = (mu1_sq + mu2_sq + C1) * (sigma1_sq + sigma2_sq + C2)
    r = pl.reciprocal(den, approx=True)
    r = r * (2.0 - den * r)                      # one Newton-Raphson step (VPU)
    return num * r


def _ssim_sum_kernel(gh_ref, gvb_ref, pred_ref, gt_ref, sum_ref):
    """Fused path: masked partial sum of the SSIM map for this grid step."""
    pack, h, w = pred_ref.shape
    ho, wo = h - WIN_SIZE + 1, w - WIN_SIZE + 1
    ho_pad = gvb_ref.shape[0] // pack
    wo_pad = gh_ref.shape[1]

    ssim = _ssim_plane_map(gh_ref, gvb_ref, pred_ref, gt_ref)
    ssim3 = ssim.reshape(pack, ho_pad, wo_pad)
    rows = lax.broadcasted_iota(jnp.int32, ssim3.shape, 1)
    cols = lax.broadcasted_iota(jnp.int32, ssim3.shape, 2)
    masked = jnp.where((rows < ho) & (cols < wo), ssim3, 0.0)
    sum_ref[...] = jnp.sum(masked, keepdims=True)


def _ssim_map_kernel(gh_ref, gvb_ref, pred_ref, gt_ref, out_ref):
    """Spatial-map path (used only when a `valid` mask is supplied)."""
    ssim = _ssim_plane_map(gh_ref, gvb_ref, pred_ref, gt_ref)
    out_ref[...] = ssim.reshape(out_ref.shape)


def _prep(pred):
    B, C, H, W = pred.shape
    Ho, Wo = H - WIN_SIZE + 1, W - WIN_SIZE + 1
    Hp = _round_up(H, 8)
    Ho_pad = _round_up(Ho, 8)
    Wo_pad = _round_up(Wo, 128)
    n_planes = B * C
    pack = _choose_pack(n_planes, H)
    n_steps = n_planes // pack
    return H, W, Ho, Wo, Hp, Ho_pad, Wo_pad, n_planes, pack, n_steps


def _in_specs(pack, H, W, Hp, Ho_pad, Wo_pad):
    img_spec = pl.BlockSpec((pack, H, W), lambda i: (i, 0, 0))
    return [_const_spec((W, Wo_pad)),
            _const_spec((pack * Ho_pad, pack * Hp)),
            img_spec, img_spec]


def ssim_mean(pred, gt):
    """mean(SSIM map) with the reduction fused in-kernel (valid=None path)."""
    H, W, Ho, Wo, Hp, Ho_pad, Wo_pad, n_planes, pack, n_steps = _prep(pred)
    gh, gvb = _filter_matrices(H, W, pack)
    pred_f = pred.reshape(n_planes, H, W)
    gt_f = gt.reshape(n_planes, H, W)

    vmem_limit = _vmem_limit_bytes(
        _vmem_estimate(pack, H, W, Hp, Ho_pad, Wo_pad, spatial_out=False))

    partial = pl.pallas_call(
        _ssim_sum_kernel,
        out_shape=jax.ShapeDtypeStruct((n_steps, 1, 1), jnp.float32),
        grid_spec=pltpu.PrefetchScalarGridSpec(
            num_scalar_prefetch=0,
            grid=(n_steps,),
            in_specs=_in_specs(pack, H, W, Hp, Ho_pad, Wo_pad),
            out_specs=pl.BlockSpec((1, 1, 1), lambda i: (i, 0, 0)),
        ),
        compiler_params=pltpu.CompilerParams(
            dimension_semantics=("parallel",),
            vmem_limit_bytes=vmem_limit,
        ),
    )(gh, gvb, pred_f, gt_f)
    return jnp.sum(partial) / float(n_planes * Ho * Wo)


def ssim_spatial_map(pred, gt):
    """Per-pixel SSIM map, shape (B, C, H-10, W-10) (valid-mask path)."""
    # TODO(synk): for large planes (>=~720p on v7x's 64 MiB VMEM) add row/col
    # grid axes with a 10-pixel halo and band-limited per-tile gh/gv instead
    # of whole-plane blocks.
    B, C = pred.shape[0], pred.shape[1]
    H, W, Ho, Wo, Hp, Ho_pad, Wo_pad, n_planes, pack, n_steps = _prep(pred)
    gh, gvb = _filter_matrices(H, W, pack)
    pred_f = pred.reshape(n_planes, H, W)
    gt_f = gt.reshape(n_planes, H, W)

    vmem_limit = _vmem_limit_bytes(
        _vmem_estimate(pack, H, W, Hp, Ho_pad, Wo_pad, spatial_out=True))

    out = pl.pallas_call(
        _ssim_map_kernel,
        out_shape=jax.ShapeDtypeStruct((n_planes, Ho_pad, Wo_pad), jnp.float32),
        grid_spec=pltpu.PrefetchScalarGridSpec(
            num_scalar_prefetch=0,
            grid=(n_steps,),
            in_specs=_in_specs(pack, H, W, Hp, Ho_pad, Wo_pad),
            out_specs=pl.BlockSpec((pack, Ho_pad, Wo_pad), lambda i: (i, 0, 0)),
        ),
        compiler_params=pltpu.CompilerParams(
            dimension_semantics=("parallel",),
            vmem_limit_bytes=vmem_limit,
        ),
    )(gh, gvb, pred_f, gt_f)
    return out.reshape(B, C, Ho_pad, Wo_pad)[:, :, :Ho, :Wo]


def ssim_forward(pred, gt, valid=None, boundary_ignore=None, use_for_loss=False):
    """Mirrors SSIM.forward from fba_net/utils/image_utils.py."""
    if boundary_ignore is not None:
        pred = pred[..., boundary_ignore:-boundary_ignore,
                    boundary_ignore:-boundary_ignore]
        gt = gt[..., boundary_ignore:-boundary_ignore,
                boundary_ignore:-boundary_ignore]
        if valid is not None:
            valid = valid[..., boundary_ignore:-boundary_ignore,
                          boundary_ignore:-boundary_ignore]

    if pred.ndim == 3:
        pred = pred[None]
        gt = gt[None]

    if valid is None:
        loss = ssim_mean(pred, gt)              # fused in-kernel reduction
    else:
        loss_map = ssim_spatial_map(pred, gt)
        valid = valid[..., 5:-5, 5:-5]
        eps = 1e-12
        elem_ratio = loss_map.size / valid.size
        vf = valid.astype(jnp.float32)
        loss = (loss_map * vf).sum() / (vf.sum() * elem_ratio + eps)

    if use_for_loss:
        loss = 1.0 - loss
    return loss


def _ssim_mean_reference(pred, gt):
    """Pure-JAX/XLA reference (for a loose sanity check only)."""
    C = pred.shape[1]
    win2d = np.outer(_WIN, _WIN).astype(np.float32)
    k = jnp.asarray(np.broadcast_to(win2d, (C, 1, WIN_SIZE, WIN_SIZE)).copy())

    def filt(img):
        return lax.conv_general_dilated(
            img, k, window_strides=(1, 1), padding="VALID",
            feature_group_count=C,
            dimension_numbers=("NCHW", "OIHW", "NCHW"),
            precision=lax.Precision.HIGHEST)

    x = pred.astype(jnp.float32)
    y = gt.astype(jnp.float32)
    mu1, mu2 = filt(x), filt(y)
    exx, eyy, exy = filt(x * x), filt(y * y), filt(x * y)
    s1 = exx - mu1 * mu1
    s2 = eyy - mu2 * mu2
    s12 = exy - mu1 * mu2
    num = (2 * mu1 * mu2 + C1) * (2 * s12 + C2)
    den = (mu1 * mu1 + mu2 * mu2 + C1) * (s1 + s2 + C2)
    return jnp.mean(num / den)


if __name__ == "__main__":
    key = jax.random.PRNGKey(0)
    k1, k2 = jax.random.split(key)
    # small NCHW test shapes: batch=2, channels=4, spatial=16x16
    pred = jax.random.uniform(k1, (2, 4, 16, 16), dtype=jnp.float32)
    gt = jax.random.uniform(k2, (2, 4, 16, 16), dtype=jnp.float32)

    out = ssim_forward(pred, gt)
    out = jax.block_until_ready(out)
    assert out.shape == () and bool(jnp.isfinite(out))

    # Loose sanity check against a pure-JAX reference (kernel uses bf16 MXU
    # operands with f32 accumulation, so use a generous tolerance).
    ref = jax.block_until_ready(_ssim_mean_reference(pred, gt))
    assert abs(float(out) - float(ref)) < 5e-2, (float(out), float(ref))

    print("KERNEL_OK")
</pallas_src>

<mosaic_0001>
module attributes {stable_mosaic.version = 11 : i64} {
  func.func @_ssim_sum_kernel(%arg0: i32, %arg1: memref<16x128xbf16, #tpu.memory_space<vmem>>, %arg2: memref<16x32xbf16, #tpu.memory_space<vmem>>, %arg3: memref<2x16x16xf32, #tpu.memory_space<vmem>>, %arg4: memref<2x16x16xf32, #tpu.memory_space<vmem>>, %arg5: memref<1x1x1xf32, #tpu.memory_space<vmem>>) attributes {dimension_semantics = [#tpu.dimension_semantics<parallel>], iteration_bounds = array<i64: 4>, scalar_prefetch = 0 : i64, scratch_operands = 0 : i64, tpu.core_type = #tpu.core_type<tc>, window_params = [{pipeline_mode = #tpu.pipeline_mode<synchronous>, transform_indices = @transform_0, window_bounds = array<i64: 16, 128>}, {pipeline_mode = #tpu.pipeline_mode<synchronous>, transform_indices = @transform_1, window_bounds = array<i64: 16, 32>}, {transform_indices = @transform_2, window_bounds = array<i64: 2, 16, 16>}, {transform_indices = @transform_3, window_bounds = array<i64: 2, 16, 16>}, {transform_indices = @transform_4, window_bounds = array<i64: 1, 1, 1>}]} {
    %c0 = arith.constant 0 : index
    %c0_0 = arith.constant 0 : index
    %c0_1 = arith.constant 0 : index
    %0 = vector.load %arg3[%c0, %c0_0, %c0_1] : memref<2x16x16xf32, #tpu.memory_space<vmem>>, vector<2x16x16xf32>
    %1 = vector.shape_cast %0 : vector<2x16x16xf32> to vector<32x16xf32>
    %c0_2 = arith.constant 0 : index
    %c0_3 = arith.constant 0 : index
    %c0_4 = arith.constant 0 : index
    %2 = vector.load %arg4[%c0_2, %c0_3, %c0_4] : memref<2x16x16xf32, #tpu.memory_space<vmem>>, vector<2x16x16xf32>
    %3 = vector.shape_cast %2 : vector<2x16x16xf32> to vector<32x16xf32>
    %c0_5 = arith.constant 0 : index
    %c0_6 = arith.constant 0 : index
    %4 = vector.load %arg1[%c0_5, %c0_6] : memref<16x128xbf16, #tpu.memory_space<vmem>>, vector<16x128xbf16>
    %c0_7 = arith.constant 0 : index
    %c0_8 = arith.constant 0 : index
    %5 = vector.load %arg2[%c0_7, %c0_8] : memref<16x32xbf16, #tpu.memory_space<vmem>>, vector<16x32xbf16>
    %6 = arith.mulf %1, %1 : vector<32x16xf32>
    %7 = arith.mulf %3, %3 : vector<32x16xf32>
    %8 = arith.mulf %1, %3 : vector<32x16xf32>
    %9 = tpu.concatenate %1, %3, %6, %7, %8 in 0 : vector<32x16xf32>, vector<32x16xf32>, vector<32x16xf32>, vector<32x16xf32>, vector<32x16xf32> -> vector<160x16xf32>
    %10 = arith.truncf %9 : vector<160x16xf32> to vector<160x16xbf16>
    %cst = arith.constant dense<0.000000e+00> : vector<160x128xf32>
    %11 = tpu.matmul %10, %4, %cst {dimension_numbers = #tpu.dot_dimension_numbers<[1], [0], [0], [1], [0, 0, 1, 1], [], []>} : vector<160x16xbf16>, vector<16x128xbf16>, vector<160x128xf32> -> vector<160x128xf32>
    %12 = arith.truncf %11 : vector<160x128xf32> to vector<160x128xbf16>
    %13 = vector.extract_strided_slice %12 {offsets = [0, 0], sizes = [32, 128], strides = [1, 1]} : vector<160x128xbf16> to vector<32x128xbf16>
    %cst_9 = arith.constant dense<0.000000e+00> : vector<16x128xf32>
    %14 = tpu.matmul %5, %13, %cst_9 {dimension_numbers = #tpu.dot_dimension_numbers<[1], [0], [0], [1], [0, 0, 1, 1], [], []>} : vector<16x32xbf16>, vector<32x128xbf16>, vector<16x128xf32> -> vector<16x128xf32>
    %15 = vector.extract_strided_slice %12 {offsets = [32, 0], sizes = [32, 128], strides = [1, 1]} : vector<160x128xbf16> to vector<32x128xbf16>
    %cst_10 = arith.constant dense<0.000000e+00> : vector<16x128xf32>
    %16 = tpu.matmul %5, %15, %cst_10 {dimension_numbers = #tpu.dot_dimension_numbers<[1], [0], [0], [1], [0, 0, 1, 1], [], []>} : vector<16x32xbf16>, vector<32x128xbf16>, vector<16x128xf32> -> vector<16x128xf32>
    %17 = vector.extract_strided_slice %12 {offsets = [64, 0], sizes = [32, 128], strides = [1, 1]} : vector<160x128xbf16> to vector<32x128xbf16>
    %cst_11 = arith.constant dense<0.000000e+00> : vector<16x128xf32>
    %18 = tpu.matmul %5, %17, %cst_11 {dimension_numbers = #tpu.dot_dimension_numbers<[1], [0], [0], [1], [0, 0, 1, 1], [], []>} : vector<16x32xbf16>, vector<32x128xbf16>, vector<16x128xf32> -> vector<16x128xf32>
    %19 = vector.extract_strided_slice %12 {offsets = [96, 0], sizes = [32, 128], strides = [1, 1]} : vector<160x128xbf16> to vector<32x128xbf16>
    %cst_12 = arith.constant dense<0.000000e+00> : vector<16x128xf32>
    %20 = tpu.matmul %5, %19, %cst_12 {dimension_numbers = #tpu.dot_dimension_numbers<[1], [0], [0], [1], [0, 0, 1, 1], [], []>} : vector<16x32xbf16>, vector<32x128xbf16>, vector<16x128xf32> -> vector<16x128xf32>
    %21 = vector.extract_strided_slice %12 {offsets = [128, 0], sizes = [32, 128], strides = [1, 1]} : vector<160x128xbf16> to vector<32x128xbf16>
    %cst_13 = arith.constant dense<0.000000e+00> : vector<16x128xf32>
    %22 = tpu.matmul %5, %21, %cst_13 {dimension_numbers = #tpu.dot_dimension_numbers<[1], [0], [0], [1], [0, 0, 1, 1], [], []>} : vector<16x32xbf16>, vector<32x128xbf16>, vector<16x128xf32> -> vector<16x128xf32>
    %23 = arith.mulf %14, %14 : vector<16x128xf32>
    %24 = arith.mulf %16, %16 : vector<16x128xf32>
    %25 = arith.mulf %14, %16 : vector<16x128xf32>
    %26 = arith.subf %18, %23 : vector<16x128xf32>
    %cst_14 = arith.constant 0.000000e+00 : f32
    %27 = vector.broadcast %cst_14 : f32 to vector<16x128xf32>
    %28 = arith.maximumf %26, %27 : vector<16x128xf32>
    %29 = arith.subf %20, %24 : vector<16x128xf32>
    %cst_15 = arith.constant 0.000000e+00 : f32
    %30 = vector.broadcast %cst_15 : f32 to vector<16x128xf32>
    %31 = arith.maximumf %29, %30 : vector<16x128xf32>
    %32 = arith.subf %22, %25 : vector<16x128xf32>
    %cst_16 = arith.constant 2.000000e+00 : f32
    %33 = vector.broadcast %cst_16 : f32 to vector<16x128xf32>
    %34 = arith.mulf %33, %25 : vector<16x128xf32>
    %cst_17 = arith.constant 9.99999974E-5 : f32
    %35 = vector.broadcast %cst_17 : f32 to vector<16x128xf32>
    %36 = arith.addf %34, %35 : vector<16x128xf32>
    %cst_18 = arith.constant 2.000000e+00 : f32
    %37 = vector.broadcast %cst_18 : f32 to vector<16x128xf32>
    %38 = arith.mulf %37, %32 : vector<16x128xf32>
    %cst_19 = arith.constant 8.99999984E-4 : f32
    %39 = vector.broadcast %cst_19 : f32 to vector<16x128xf32>
    %40 = arith.addf %38, %39 : vector<16x128xf32>
    %41 = arith.mulf %36, %40 : vector<16x128xf32>
    %42 = arith.addf %23, %24 : vector<16x128xf32>
    %cst_20 = arith.constant 9.99999974E-5 : f32
    %43 = vector.broadcast %cst_20 : f32 to vector<16x128xf32>
    %44 = arith.addf %42, %43 : vector<16x128xf32>
    %45 = arith.addf %28, %31 : vector<16x128xf32>
    %cst_21 = arith.constant 8.99999984E-4 : f32
    %46 = vector.broadcast %cst_21 : f32 to vector<16x128xf32>
    %47 = arith.addf %45, %46 : vector<16x128xf32>
    %48 = arith.mulf %44, %47 : vector<16x128xf32>
    %49 = tpu.reciprocal %48 {approx = true} : vector<16x128xf32> -> vector<16x128xf32>
    %50 = arith.mulf %48, %49 : vector<16x128xf32>
    %cst_22 = arith.constant 2.000000e+00 : f32
    %51 = vector.broadcast %cst_22 : f32 to vector<16x128xf32>
    %52 = arith.subf %51, %50 : vector<16x128xf32>
    %53 = arith.mulf %49, %52 : vector<16x128xf32>
    %54 = arith.mulf %41, %53 : vector<16x128xf32>
    %55 = vector.shape_cast %54 : vector<16x128xf32> to vector<2x8x128xf32>
    %56 = tpu.iota {dimensions = array<i32: 1>} : vector<2x8x128xi32>
    %57 = tpu.iota {dimensions = array<i32: 2>} : vector<2x8x128xi32>
    %c6_i32 = arith.constant 6 : i32
    %58 = vector.broadcast %c6_i32 : i32 to vector<2x8x128xi32>
    %59 = arith.cmpi slt, %56, %58 : vector<2x8x128xi32>
    %c6_i32_23 = arith.constant 6 : i32
    %60 = vector.broadcast %c6_i32_23 : i32 to vector<2x8x128xi32>
    %61 = arith.cmpi slt, %57, %60 : vector<2x8x128xi32>
    %62 = arith.andi %59, %61 : vector<2x8x128xi1>
    %cst_24 = arith.constant 0.000000e+00 : f32
    %63 = vector.broadcast %cst_24 : f32 to vector<2x8x128xf32>
    %64 = arith.select %62, %55, %63 : vector<2x8x128xi1>, vector<2x8x128xf32>
    %65 = vector.shape_cast %64 : vector<2x8x128xf32> to vector<1x2x8x128xf32>
    %cst_25 = arith.constant dense<0.000000e+00> : vector<1xf32>
    %66 = vector.multi_reduction <add>, %65, %cst_25 [1, 2, 3] : vector<1x2x8x128xf32> to vector<1xf32>
    %67 = vector.shape_cast %66 : vector<1xf32> to vector<1x1x1x1xf32>
    %68 = vector.extract %67[0, 0, 0, 0] : f32 from vector<1x1x1x1xf32>
    %69 = vector.broadcast %68 : f32 to vector<1x1x1xf32>
    %c0_26 = arith.constant 0 : index
    %c0_27 = arith.constant 0 : index
    %c0_28 = arith.constant 0 : index
    %70 = vector.load %arg5[%c0_26, %c0_27, %c0_28] : memref<1x1x1xf32, #tpu.memory_space<vmem>>, vector<1x1x1xf32>
    tpu.vector_store %arg5[%c0_26, %c0_27, %c0_28], %69 {strides = array<i32>} : memref<1x1x1xf32, #tpu.memory_space<vmem>>, vector<1x1x1xf32>,
    return
  }
  func.func @transform_0(%arg0: i32) -> (i32, i32) {
    %c0_i32 = arith.constant 0 : i32
    %c0_i32_0 = arith.constant 0 : i32
    %c0_i32_1 = arith.constant 0 : i32
    return %c0_i32, %c0_i32_0 : i32, i32
  }
  func.func @transform_1(%arg0: i32) -> (i32, i32) {
    %c0_i32 = arith.constant 0 : i32
    %c0_i32_0 = arith.constant 0 : i32
    %c0_i32_1 = arith.constant 0 : i32
    return %c0_i32, %c0_i32_0 : i32, i32
  }
  func.func @transform_2(%arg0: i32) -> (i32, i32, i32) {
    %c0_i32 = arith.constant 0 : i32
    %c0_i32_0 = arith.constant 0 : i32
    %c0_i32_1 = arith.constant 0 : i32
    return %arg0, %c0_i32, %c0_i32_0 : i32, i32, i32
  }
  func.func @transform_3(%arg0: i32) -> (i32, i32, i32) {
    %c0_i32 = arith.constant 0 : i32
    %c0_i32_0 = arith.constant 0 : i32
    %c0_i32_1 = arith.constant 0 : i32
    return %arg0, %c0_i32, %c0_i32_0 : i32, i32, i32
  }
  func.func @transform_4(%arg0: i32) -> (i32, i32, i32) {
    %c0_i32 = arith.constant 0 : i32
    %c0_i32_0 = arith.constant 0 : i32
    %c0_i32_1 = arith.constant 0 : i32
    return %arg0, %c0_i32, %c0_i32_0 : i32, i32, i32
  }
}

</mosaic_0001>

<bundles_post_ra>
// kernel: tpu_custom_call.1
= control target key start
LH: loop header
LB: loop body
LE: loop exit
PB: predicated region body
PF: predicated region fallthrough
CT: control target
= control target key end

     0   :  { %s1240_s0 = inlined_call_operand.hbm [shape: bf16[16,128], index: 0, kind: input, shape index: {}]   ;;  %s1241_s1 = inlined_call_operand.hbm [shape: bf16[16,32], index: 1, kind: input, shape index: {}]   ;;  %s1242_s2 = inlined_call_operand.hbm [shape: f32[8,16,16], index: 2, kind: input, shape index: {}]   ;;  %s1243_s3 = inlined_call_operand.hbm [shape: f32[8,16,16], index: 3, kind: input, shape index: {}]   ;;  %s1244_s4 = inlined_call_operand.vmem [shape: f32[4,1,1], index: 4, kind: output, shape index: {}]  }
   0x1   :  { %1247 = sst [smem:[#allocation11_spill]] %s1240_s0 }
   0x2   :  { %1248 = sst [smem:[#allocation12_spill]] %s1241_s1 }
   0x3   :  { %1249 = sst [smem:[#allocation13_spill]] %s1242_s2 }
   0x4   :  { %9 = vsyncpa [#allocation3], 0 }
   0x5   :  { %10 = vsyncpa [#allocation5], 0  ;;  %s1068_s15 = smov 0   ;;  %s1070_s16 = smov 0  }
   0x6   :  { %s1072_s17 = smov 0   ;;  %s1074_s18 = smov 0  }
   0x7 LB: > { %s1087_s19 = sadd.s32 4294967295, %s1035_s18   ;;  %p78_p0 = scmp.ne.s32.totalorder %s1027_s16, %s1023_s15  ;;  %s1035_s18 = sphi %s1074_s18, %s1262_s18   ;;  %s1031_s17 = sphi %s1072_s17, %s1261_s17   ;;  %s1027_s16 = sphi %s1070_s16, %s1260_s16   ;;  %s1023_s15 = sphi %s1068_s15, %s1259_s15  }
   0x8   : > { %p79_p1 = scmp.eq.s32.totalorder %s1087_s19, 0  ;;  %p747_p2 = scmp.ge.s32.totalorder %s1035_s18, 1 }
   0x9   : > { %p141_p3 = scmp.lt.s32.totalorder %s1035_s18, 5  ;;  %s1251_s0 = sld [smem:[#allocation11_spill]] }
   0xa   : > { %p1095_p4 = por %p79_p1, %p78_p0  ;;  %s1037_s25 = smov [#allocation2]  }
   0xb   : > { %p1102_p5 = pnand %p747_p2, %p141_p3  ;;  %s154_s26 = sshll.u32 %s1037_s25, 4  ;;  %s155_s26 = int_to_ptr.vmem [resolvable:$true] %s154_s26 }
   0xc   : > { %s1115_s28 = sadd.s32 1, %s1035_s18   ;;  %s1245_s29 = smov 64  }
   0xd   : > { %p812_p6 = pneg %p1102_p5  ;;  %s1246_s30 = smov 4  }
   0xe   : > { %s62_s5 = ssub.s32 %s1035_s18, %s1115_s28  ;;  %s65_s6 = sadd.s32 1, %s1031_s17 }
   0xf   : > { %s152_s23 = sshll.u32 %s1251_s0, 4  ;;  %p1110_p7 = pnand %p812_p6, %p79_p1  ;;  %s153_s23 = int_to_ptr.hbm [resolvable:$true] %s152_s23 }
  0x10   : > { %p63_p8 = scmp.eq.s32.totalorder %s62_s5, 0  ;;  %p72_p9 = scmp.ne.s32.totalorder %s1031_s17, %s1027_s16 }
  0x11   : > { %815 = dma.hbm_to_vmem [thread:$0]  (!%p1110_p7), %s153_s23, 128, %s155_s26, [#allocation3], %s1245_s29, %s1245_s29, %s1246_s30  }
  0x12   : > { %p73_p10 = scmp.eq.s32.totalorder %s1035_s18, 0  ;;  %p828_p11 = scmp.lt.s32.totalorder %s1035_s18, 4 }
  0x13   : > { %s1130_s7 = scalar_select %p63_p8, %s1031_s17, %s65_s6  }
  0x14   : > { %p74_p12 = por %p73_p10, %p72_p9  ;;  %s182_s8 = sand.u32 1, %s1035_s18  }
  0x15   : > { %s184_s9 = sand.u32 1, %s1031_s17   ;;  %s790_s11 = sshll.u32 %s1035_s18, 5 }
  0x16   : > { %s1134_s10 = sshll.u32 %s184_s9, 5  ;;  %s1254_s2 = sld [smem:[#allocation13_spill]] }
  0x17   : > { %s186_s21 = scalar_lea.vmem [#allocation6], %s1134_s10  ;;  %p1145_p13 = pnand %p828_p11, %p74_p12 }
  0x18   : > { %s195_s22 = sshll.u32 %s186_s21, 4  ;;  %s1256_s1 = sld [smem:[#allocation12_spill]]  ;;  %s196_s22 = int_to_ptr.vmem [resolvable:$true] %s195_s22 }
  0x19   : > { %s1152_s6 = scalar_lea.sflag [#allocation3], %s182_s8  ;;  %p907_p2 = pneg %p1145_p13 }
  0x1c   : > { %s192_s14 = scalar_lea.hbm %s1254_s2, %s790_s11  ;;  %s910_s21 = scalar_lea.hbm %s1254_s2, 128 }
  0x1d   : > { %s193_s15 = sshll.u32 %s192_s14, 4  ;;  %s194_s15 = int_to_ptr.hbm [resolvable:$true] %s193_s15 }
  0x1e   : > { %s166_s5 = sshll.u32 %s1256_s1, 4  ;;  %s903_s9 = sshra.s32 %s194_s15, 4  ;;  %s167_s5 = int_to_ptr.hbm [resolvable:$true] %s166_s5  ;;  %s904_s9 = int_to_ptr.hbm [resolvable:$true] %s903_s9 }
  0x1f   : > { %s905_s12 = scalar_lea.hbm %s904_s9, 32  ;;  %p911_p8 = scmp.lt.s32.totalorder %s904_s9, %s1254_s2 }
  0x20   : > { %p906_p0 = scmp.ne.s32.totalorder %s904_s9, %s905_s12  ;;  %p912_p9 = scmp.lt.s32.totalorder %s910_s21, %s905_s12 }
  0x22   : > { %p908_p3 = pnand %p907_p2, %p906_p0  ;;  %p913_p10 = por %p912_p9, %p911_p8 }
  0x24   : > { %p909_p6 = pneg %p908_p3 }
  0x26   : > { %p914_p11 = pnand %p913_p10, %p909_p6 }
  0x28   : > { %917 = shalt.err (!%p914_p11)
}
  0x29   : > { %s1040_s8 = smov 128   ;;  %s1041_s29 = smov 8  }
  0x2a   : > { %822 = dma.hbm_to_vmem [thread:$0]  (!%p1145_p13), %s194_s15, 512, %s196_s22, %s1152_s6, %s1040_s8, %s1040_s8, %s1041_s29  }
  0x2b   : > { %s1042_s13 = smov [#allocation4]   ;;  %s215_s9 = scalar_lea.hbm %s1243_s3, %s790_s11 }
  0x2c   : > { %s168_s14 = sshll.u32 %s1042_s13, 4  ;;  %s216_s12 = sshll.u32 %s215_s9, 4  ;;  %s169_s14 = int_to_ptr.vmem [resolvable:$true] %s168_s14  ;;  %s217_s12 = int_to_ptr.hbm [resolvable:$true] %s216_s12 }
  0x2d   : > { %s1257_s21 = smov 4   ;;  %s1258_s26 = smov 64  }
  0x2e   : > { %818 = dma.hbm_to_vmem [thread:$0]  (!%p1110_p7), %s167_s5, 128, %s169_s14, [#allocation5], %s1258_s26, %s1258_s26, %s1257_s21  }
  0x2f   : > { %s209_s0 = scalar_lea.vmem [#allocation7], %s1134_s10  ;;  %s963_s2 = sshra.s32 %s217_s12, 4  ;;  %s964_s2 = int_to_ptr.hbm [resolvable:$true] %s963_s2 }
  0x30   : > { %s218_s1 = sshll.u32 %s209_s0, 4  ;;  %s965_s15 = scalar_lea.hbm %s964_s2, 32  ;;  %s219_s1 = int_to_ptr.vmem [resolvable:$true] %s218_s1 }
  0x31   : > { %p966_p12 = scmp.ne.s32.totalorder %s964_s2, %s965_s15  ;;  %s970_s27 = scalar_lea.hbm %s1243_s3, 128 }
  0x32   : > { %p971_p7 = scmp.lt.s32.totalorder %s964_s2, %s1243_s3  ;;  %p972_p6 = scmp.lt.s32.totalorder %s970_s27, %s965_s15 }
  0x33   : > { %p968_p0 = pnand %p966_p12, %p907_p2 }
  0x34   : > { %p973_p8 = por %p972_p6, %p971_p7 }
  0x35   : > { %p969_p3 = pneg %p968_p0 }
  0x37   : > { %p974_p9 = pnand %p973_p8, %p969_p3 }
  0x39   : > { %977 = shalt.err (!%p974_p9)
}
  0x3a   : > { %825 = dma.hbm_to_vmem [thread:$0]  (!%p1145_p13), %s217_s12, 512, %s219_s1, %s1152_s6, %s1040_s8, %s1040_s8, %s1041_s29  }
  0x3b   : > { %230 = sbr.rel (%p1102_p5) target bundleno = 620 (0x26c), region = 36 }
  0x40   : > { %1010 = dma.done.wait (%p79_p1), [#allocation3], 128  }
  0x41   : > { %1012 = vsyncadd (%p79_p1), [#allocation3], 4294967168 }
  0x42   : > { %1014 = dma.done.wait (%p79_p1), [#allocation5], 128  }
  0x43   : > { %1016 = vsyncadd (%p79_p1), [#allocation5], 4294967168  ;;  %s242_s0 = sand.u32 1, %s1087_s19   ;;  %s244_s1 = sand.u32 1, %s1027_s16  }
  0x44   : > { %s762_s2 = sshll.u32 %s244_s1, 5  ;;  %s243_s24 = scalar_lea.sflag [#allocation3], %s242_s0 }
  0x45   : > { %s246_s29 = scalar_lea.vmem [#allocation6], %s762_s2 }
  0x46   : > { %1018 = dma.done.wait (%p1095_p4), %s243_s24, 1024  }
  0x47   : > { %1020 = vsyncadd (%p1095_p4), %s243_s24, 4294966272  ;;  %v793_v0 = vld [vmem:[#allocation2] sm:$0xff]  ;;  %v291_v1 = vld [vmem:[%s246_s29] sm:$0xff]  ;;  %s256_s10 = scalar_lea.vmem [#allocation7], %s762_s2  ;;  %vm331_vm0 = vcmask 130048   ;;  %vm458_vm1 = vcmask 261120  }
  0x48   : > { %v292_v2 = vld [vmem:[%s246_s29 + $0x8] sm:$0xff]  ;;  %v297_v4 = vld [vmem:[%s256_s10 + $0x10] sm:$0xff]  ;;  %v298_v5 = vld [vmem:[%s256_s10 + $0x18] sm:$0xff]  ;;  %v303_v7 = vmul.f32 %v291_v1, %v291_v1  ;;  %369 = vmatpush.bf16.msra.mxu0 %v793_v0  ;;  %797 = vmatpush.bf16.msra.mxu3 %v793_v0  ;;  %p287_p1 = scmp.lt.s32.totalorder %s1087_s19, 3  ;;  %vm646_vm5 = vcmask 0  }
  0x49   : > { %v315_v3 = vpack.c.bf16 %v292_v2, %v291_v1  ;;  %v293_v6 = vld [vmem:[%s246_s29 + $0x10] sm:$0xff]  ;;  %v304_v8 = vmul.f32 %v292_v2, %v292_v2  ;;  %v309_v9 = vmul.f32 %v297_v4, %v297_v4  ;;  %v310_v10 = vmul.f32 %v298_v5, %v298_v5  ;;  %v294_v11 = vld [vmem:[%s246_s29 + $0x18] sm:$0xff]  ;;  %796 = vmatpush.bf16.msra.mxu2 %v793_v0  ;;  %v295_v17 = vld [vmem:[%s256_s10] sm:$0xff] }
  0x4a   : > { %v305_v12 = vmul.f32 %v293_v6, %v293_v6  ;;  %v306_v13 = vmul.f32 %v294_v11, %v294_v11  ;;  %795 = vmatpush.bf16.msra.mxu1 %v793_v0  ;;  %v296_v18 = vld [vmem:[%s256_s10 + $0x8] sm:$0xff]  ;;  %v311_v19 = vmul.f32 %v295_v17, %v291_v1  ;;  %v307_v21 = vmul.f32 %v295_v17, %v295_v17  ;;  %v794_v58 = vld [vmem:[#allocation4] sm:$0xff]  ;;  %s1264_s19 = smov (!%p287_p1, %s1087_s19), 3 }
  0x4b   : > { %v322_v14 = vpack.c.bf16 %v310_v10, %v309_v9  ;;  %v319_v15 = vpack.c.bf16 %v304_v8, %v303_v7  ;;  %768 = vmatmul.msk.bf16.vlgmr.msra.gmra.mxu0 %vm331_vm0, %v315_v3  ;;  %v312_v20 = vmul.f32 %v296_v18, %v292_v2  ;;  %v308_v22 = vmul.f32 %v296_v18, %v296_v18  ;;  %s289_s5 = scalar_lea.vmem %s1244_s4, %s1264_s19 }
  0x4c   : > { %v320_v16 = vpack.c.bf16 %v306_v13, %v305_v12  ;;  %v316_v23 = vpack.c.bf16 %v294_v11, %v293_v6  ;;  %v313_v26 = vmul.f32 %v297_v4, %v293_v6  ;;  %v314_v27 = vmul.f32 %v298_v5, %v294_v11 }
  0x4d   : > { %775 = vmatmul.msk.bf16.vlgmr.msra.gmra.mxu3 %vm331_vm0, %v322_v14  ;;  %772 = vmatmul.msk.bf16.vlgmr.msra.gmra.mxu1 %vm331_vm0, %v319_v15  ;;  %v323_v24 = vpack.c.bf16 %v312_v20, %v311_v19  ;;  %v321_v25 = vpack.c.bf16 %v308_v22, %v307_v21  ;;  %v317_v28 = vpack.c.bf16 %v296_v18, %v295_v17 }
  0x4e   : > { %773 = vmatmul.msk.bf16.vlgmr.msra.gmra.mxu2 %vm331_vm0, %v320_v16  ;;  %v324_v29 = vpack.c.bf16 %v314_v27, %v313_v26  ;;  %v318_v30 = vpack.c.bf16 %v298_v5, %v297_v4 }
  0x5b   : > { %769 = vmatmul.msk.bf16.gmra.mxu0 %vm331_vm0, %v316_v23 }
  0x5d   : > { %776 = vmatmul.msk.bf16.gmra.mxu3 %vm331_vm0, %v323_v24 }
  0x5e   : > { %774 = vmatmul.msk.bf16.gmra.mxu2 %vm331_vm0, %v321_v25 }
  0x6b   : > { %770 = vmatmul.msk.bf16.gmra.mxu0 %vm331_vm0, %v317_v28 }
  0x6d   : > { %777 = vmatmul.msk.bf16.gmra.mxu3 %vm331_vm0, %v324_v29 }
  0x7b   : > { %771 = vmatmul.msk.bf16.gmra.mxu0 %vm331_vm0, %v318_v30 }
  0xc8   : > { %v371_v31 = vpop.f32.mrf.mxu0 }
  0xc9   : > { %v421_v59 = vpack.c.bf16 %v371_v31, %v371_v31 }
  0xca   : > { %v391_v32 = vpop.f32.mrf.mxu1 }
  0xcb   : > { %v429_v39 = vpack.c.bf16 %v391_v32, %v391_v32  ;;  %v450_v3 = vunpack.c.l.b16 %v421_v59 }
  0xcd   : > { %v506_v46 = vunpack.c.l.b16 %v429_v39 }
  0xd0   : > { %v406_v33 = vpop.f32.mrf.mxu3  ;;  %v373_v34 = vpop.f32.mrf.mxu0 }
  0xd1   : > { %v396_v35 = vpop.f32.mrf.mxu2  ;;  %v435_v52 = vpack.c.bf16 %v406_v33, %v406_v33  ;;  %v422_v56 = vpack.c.bf16 %v373_v34, %v373_v34 }
  0xd2   : > { %v393_v36 = vpop.f32.mrf.mxu1  ;;  %v431_v37 = vpack.c.bf16 %v396_v35, %v396_v35 }
  0xd3   : > { %v430_v40 = vpack.c.bf16 %v393_v36, %v393_v36  ;;  %v534_v62 = vunpack.c.l.b16 %v435_v52  ;;  %v451_v0 = vunpack.c.l.b16 %v422_v56 }
  0xd4   : > { %v508_v43 = vunpack.c.l.b16 %v431_v37 }
  0xd5   : > { %v507_v47 = vunpack.c.l.b16 %v430_v40  ;;  %v454_v7 = vpack.c.b16 %v451_v0, %v450_v3 }
  0xd7   : > { %v510_v51 = vpack.c.b16 %v507_v47, %v506_v46 }
  0xd8   : > { %v408_v38 = vpop.f32.mrf.mxu3  ;;  %v376_v41 = vpop.f32.mrf.mxu0 }
  0xd9   : > { %v398_v42 = vpop.f32.mrf.mxu2  ;;  %v423_v49 = vpack.c.bf16 %v376_v41, %v376_v41  ;;  %v436_v54 = vpack.c.bf16 %v408_v38, %v408_v38 }
  0xda   : > { %v432_v44 = vpack.c.bf16 %v398_v42, %v398_v42 }
  0xdb   : > { %v452_v60 = vunpack.c.l.b16 %v423_v49  ;;  %v535_v63 = vunpack.c.l.b16 %v436_v54 }
  0xdc   : > { %v509_v45 = vunpack.c.l.b16 %v432_v44 }
  0xdd   : > { %v537_v4 = vpack.c.b16 %v535_v63, %v534_v62 }
  0xde   : > { %v511_v48 = vpack.c.b16 %v509_v45, %v508_v43 }
  0xe0   : > { %v411_v50 = vpop.f32.mrf.mxu3  ;;  %520 = vmatpush.bf16.msrb.mxu3 %v511_v48  ;;  %v378_v53 = vpop.f32.mrf.mxu0 }
  0xe1   : > { %v401_v55 = vpop.f32.mrf.mxu2  ;;  %v424_v57 = vpack.c.bf16 %v378_v53, %v378_v53  ;;  %v437_v30 = vpack.c.bf16 %v411_v50, %v411_v50 }
  0xe2   : > { %v433_v2 = vpack.c.bf16 %v401_v55, %v401_v55 }
  0xe3   : > { %v453_v61 = vunpack.c.l.b16 %v424_v57  ;;  %v558_v35 = vunpack.c.l.b16 %v437_v30 }
  0xe4   : > { %521 = vmatpush.bf16.msrb.mxu3 %v510_v51  ;;  %v532_v9 = vunpack.c.l.b16 %v433_v2 }
  0xe5   : > { %v455_v1 = vpack.c.b16 %v453_v61, %v452_v60 }
  0xe7   : > { %784 = vmatmul.msk.bf16.vlgmr.msrb.gmra.mxu3 %vm458_vm1, %v794_v58  ;;  %468 = vmatpush.bf16.msrb.mxu1 %v455_v1 }
  0xe8   : > { %v381_v5 = vpop.f32.mrf.mxu0  ;;  %v413_v8 = vpop.f32.mrf.mxu3 }
  0xe9   : > { %v403_v6 = vpop.f32.mrf.mxu2  ;;  %v425_v23 = vpack.c.bf16 %v381_v5, %v381_v5  ;;  %v438_v31 = vpack.c.bf16 %v413_v8, %v413_v8 }
  0xea   : > { %v434_v10 = vpack.c.bf16 %v403_v6, %v403_v6 }
  0xeb   : > { %469 = vmatpush.bf16.msrb.mxu1 %v454_v7  ;;  %v480_v32 = vunpack.c.l.b16 %v425_v23  ;;  %v559_v36 = vunpack.c.l.b16 %v438_v31 }
  0xec   : > { %v533_v11 = vunpack.c.l.b16 %v434_v10 }
  0xed   : > { %v562_v37 = vpack.c.b16 %v559_v36, %v558_v35 }
  0xee   : > { %v536_v12 = vpack.c.b16 %v533_v11, %v532_v9  ;;  %782 = vmatmul.msk.bf16.vlgmr.msrb.gmra.mxu1 %vm458_vm1, %v794_v58 }
  0xef   : > { %546 = vmatpush.bf16.msra.mxu1 %v537_v4 }
  0xf0   : > { %v383_v13 = vpop.f32.mrf.mxu0  ;;  %v416_v14 = vpop.f32.mrf.mxu3 }
  0xf1   : > { %v439_v18 = vpack.c.bf16 %v416_v14, %v416_v14  ;;  %v426_v21 = vpack.c.bf16 %v383_v13, %v383_v13 }
  0xf3   : > { %547 = vmatpush.bf16.msra.mxu1 %v536_v12  ;;  %v560_v26 = vunpack.c.l.b16 %v439_v18  ;;  %v481_v28 = vunpack.c.l.b16 %v426_v21  ;;  %v626_v12 = vlaneseq }
  0xf5   : > { %v484_v34 = vpack.c.b16 %v481_v28, %v480_v32 }
  0xf8   : > { %v386_v15 = vpop.f32.mrf.mxu0  ;;  %v418_v16 = vpop.f32.mrf.mxu3 }
  0xf9   : > { %v427_v17 = vpack.c.bf16 %v386_v15, %v386_v15  ;;  %v440_v20 = vpack.c.bf16 %v418_v16, %v418_v16 }
  0xfb   : > { %v482_v24 = vunpack.c.l.b16 %v427_v17  ;;  %v561_v27 = vunpack.c.l.b16 %v440_v20  ;;  %v629_v20 = vand.u32 127, %v626_v12 }
  0xfd   : > { %v563_v33 = vpack.c.b16 %v561_v27, %v560_v26  ;;  %vm631_vm3 = vcmp.lt.s32.totalorder %v629_v20, 6 }
  0xfe   : > { %785 = vmatmul.msk.bf16.vlgmr.msra.gmra.mxu1 %vm458_vm1, %v794_v58 }
 0x100   : > { %v388_v19 = vpop.f32.mrf.mxu0 }
 0x101   : > { %v428_v22 = vpack.c.bf16 %v388_v19, %v388_v19  ;;  %v627_v19 = vshrl.u32 %v626_v12, 7 }
 0x103   : > { %v483_v25 = vunpack.c.l.b16 %v428_v22  ;;  %vm630_vm2 = vcmp.lt.s32.totalorder %v627_v19, 6 }
 0x104   : > { %vm632_vm4 = vmand %vm630_vm2, %vm631_vm3 }
 0x105   : > { %v485_v29 = vpack.c.b16 %v483_v25, %v482_v24 }
 0x107   : > { %494 = vmatpush.bf16.msrb.mxu2 %v485_v29 }
 0x10b   : > { %495 = vmatpush.bf16.msrb.mxu2 %v484_v34 }
 0x10e   : > { %783 = vmatmul.msk.bf16.vlgmr.msrb.gmra.mxu2 %vm458_vm1, %v794_v58 }
 0x10f   : > { %572 = vmatpush.bf16.msra.mxu2 %v563_v33 }
 0x113   : > { %573 = vmatpush.bf16.msra.mxu2 %v562_v37 }
 0x11e   : > { %786 = vmatmul.msk.bf16.vlgmr.msra.gmra.mxu2 %vm458_vm1, %v794_v58 }
 0x16a   : > { %v523_v40 = vpop.f32.mrf.mxu3 }
 0x16b   : > { %v471_v38 = vpop.f32.mrf.mxu1 }
 0x16c   : > { %v580_v41 = vmul.f32 %v471_v38, %v471_v38 }
 0x16e   : > { %v586_v45 = vsub.f32 %v523_v40, %v580_v41 }
 0x170   : > { %v588_v49 = vmax.f32 %v586_v45, 0.0 }
 0x172   : > { %v525_v51 = vpop.f32.mrf.mxu3 }
 0x173   : > { %v473_v39 = vpop.f32.mrf.mxu1 }
 0x174   : > { %v581_v47 = vmul.f32 %v473_v39, %v473_v39 }
 0x176   : > { %v587_v57 = vsub.f32 %v525_v51, %v581_v47 }
 0x178   : > { %v589_v62 = vmax.f32 %v587_v57, 0.0 }
 0x17b   : > { %v549_v43 = vpop.f32.mrf.mxu1 }
 0x183   : > { %v551_v58 = vpop.f32.mrf.mxu1 }
 0x191   : > { %v497_v42 = vpop.f32.mrf.mxu2 }
 0x192   : > { %v582_v44 = vmul.f32 %v497_v42, %v497_v42  ;;  %v584_v0 = vmul.f32 %v497_v42, %v471_v38 }
 0x194   : > { %v590_v46 = vsub.f32 %v549_v43, %v582_v44  ;;  %v606_v48 = vadd.f32 %v582_v44, %v580_v41  ;;  %v596_v11 = vmul.f32 2.0, %v584_v0 }
 0x196   : > { %v592_v50 = vmax.f32 %v590_v46, 0.0  ;;  %v608_v54 = vadd.f32 0.0001, %v606_v48  ;;  %v598_v18 = vadd.f32 0.0001, %v596_v11 }
 0x198   : > { %v610_v52 = vadd.f32 %v592_v50, %v588_v49 }
 0x199   : > { %v499_v53 = vpop.f32.mrf.mxu2 }
 0x19a   : > { %v612_v55 = vadd.f32 0.0009, %v610_v52  ;;  %v583_v56 = vmul.f32 %v499_v53, %v499_v53  ;;  %v585_v10 = vmul.f32 %v499_v53, %v473_v39 }
 0x19c   : > { %v614_v59 = vmul.f32 %v612_v55, %v608_v54  ;;  %v591_v60 = vsub.f32 %v551_v58, %v583_v56  ;;  %v607_v61 = vadd.f32 %v583_v56, %v581_v47  ;;  %v597_v16 = vmul.f32 2.0, %v585_v10 }
 0x19e   : > { %869 = vrcp.f32 %v614_v59  ;;  %v593_v63 = vmax.f32 %v591_v60, 0.0  ;;  %v609_v3 = vadd.f32 0.0001, %v607_v61  ;;  %v599_v26 = vadd.f32 0.0001, %v597_v16 }
 0x1a0   : > { %v611_v1 = vadd.f32 %v593_v63, %v589_v62 }
 0x1a1   : > { %v575_v2 = vpop.f32.mrf.mxu2 }
 0x1a2   : > { %v613_v4 = vadd.f32 0.0009, %v611_v1  ;;  %v594_v5 = vsub.f32 %v575_v2, %v584_v0 }
 0x1a4   : > { %v870_v6 = vpop.eup %869  ;;  %v615_v7 = vmul.f32 %v613_v4, %v609_v3  ;;  %v600_v8 = vmul.f32 2.0, %v594_v5 }
 0x1a5   : > { %v618_v9 = vmul.f32 %v870_v6, %v614_v59 }
 0x1a6   : > { %871 = vrcp.f32 %v615_v7  ;;  %v602_v13 = vadd.f32 0.0009, %v600_v8 }
 0x1a7   : > { %v620_v15 = vsub.f32 2.0, %v618_v9 }
 0x1a8   : > { %v604_v23 = vmul.f32 %v602_v13, %v598_v18 }
 0x1a9   : > { %v577_v14 = vpop.f32.mrf.mxu2  ;;  %v622_v25 = vmul.f32 %v870_v6, %v620_v15 }
 0x1aa   : > { %v595_v17 = vsub.f32 %v577_v14, %v585_v10 }
 0x1ab   : > { %v624_v31 = vmul.f32 %v622_v25, %v604_v23 }
 0x1ac   : > { %v872_v21 = vpop.eup %871  ;;  %v601_v22 = vmul.f32 2.0, %v595_v17 }
 0x1ad   : > { %v619_v24 = vmul.f32 %v872_v21, %v615_v7  ;;  %v633_v33 = vsel %vm632_vm4, %v624_v31, 0.0 }
 0x1ae   : > { %v603_v27 = vadd.f32 0.0009, %v601_v22 }
 0x1af   : > { %v621_v28 = vsub.f32 2.0, %v619_v24 }
 0x1b0   : > { %v605_v29 = vmul.f32 %v603_v27, %v599_v26 }
 0x1b1   : > { %v623_v30 = vmul.f32 %v872_v21, %v621_v28 }
 0x1b3   : > { %v625_v32 = vmul.f32 %v623_v30, %v605_v29 }
 0x1b5   : > { %v634_v34 = vsel %vm632_vm4, %v625_v32, 0.0 }
 0x1b6   : > { %v635_v35 = vadd.f32 %v634_v34, %v633_v33 }
 0x1b8   : > { %636 = vadd.xlane.f32.xlu0 %v635_v35 }
 0x22b   : > { %v637_v36 = vpop.xlane.xlu0 %636 }
 0x22c   : > { %v638_v37 = vrot.slane %v637_v36, 4 }
 0x22e   : > { %v639_v38 = vadd.f32 %v638_v37, %v637_v36 }
 0x230   : > { %v640_v39 = vrot.slane %v639_v38, 2 }
 0x232   : > { %v641_v40 = vadd.f32 %v640_v39, %v639_v38 }
 0x234   : > { %v642_v41 = vrot.slane %v641_v40, 1 }
 0x236   : > { %v643_v42 = vadd.f32 %v642_v41, %v641_v40 }
 0x238   : > { %798 = vpush %v643_v42 }
 0x269   : > { %s799_s6 = spop %798 }
 0x26a   : > { %v645_v43 = vstv %s799_s6 }
 0x26b   : > { %647 = vst.msk [vmem:[%s289_s5] sm:$0x1] %vm646_vm5, %v645_v43 }
 0x26c PF: > { %p13_p4 = scmp.ge.s32.totalorder %s1115_s28, 6   ;;  %s1259_s15 = smov %s1027_s16 }
 0x26d   : > { %s1260_s16 = smov %s1031_s17  ;;  %s1261_s17 = smov %s1130_s7 }
 0x26e   : > { %s1262_s18 = smov %s1115_s28  ;;  %15 = sbr.rel (!%p13_p4) target bundleno = 7 (0x7), region = 94 }
 0x273   :  { %665 = vsyncpa [#allocation3], 1 }
 0x274   :  { %667 = vsyncpa [#allocation3 + $0x1], 1 }
 0x275   :  { %668 = vsyncpa [#allocation5], 1 }

</bundles_post_ra>
